<compile_context>
chip_gen: v5e
topology: v5e:2x2
jax: 0.10.0
libtpu: 0.0.40
codegen_flags: <defaults>
</compile_context>

<pallas_src>
import functools

import jax
import jax.numpy as jnp
from jax import lax
from jax.experimental import pallas as pl
from jax.experimental.pallas import tpu as pltpu


def _round_up(x: int, m: int) -> int:
    return ((x + m - 1) // m) * m


def _lane_pad(n: int) -> int:
    return _round_up(max(int(n), 1), 128)


def _vmem_capacity_bytes() -> int:
    try:
        cap = getattr(pltpu.get_tpu_info(), "vmem_capacity_bytes", None)
        if cap:
            return int(cap)
    except Exception:
        pass
    return 64 * 1024 * 1024  # conservative (v7x per-TensorCore VMEM)


def _tile_partial_sum(x):
    """(tile_b, D) -> (8, D) partial sums: leading-dim split + VPU adds only."""
    tb, d = x.shape
    return jnp.sum(x.reshape(tb // 8, 8, d), axis=0)


# ---------------------------------------------------------------------------
# Path A: centers table resident in VMEM, gather = one-hot MXU matmul.
# ---------------------------------------------------------------------------
def _center_loss_vmem_kernel(true_batch, has_pad,
                             labels_ref,    # VMEM (tile_b, 1) i32
                             feats_ref,     # VMEM (tile_b, D) f32
                             centers_ref,   # VMEM (C, D) f32 (constant block)
                             out_ref):      # VMEM (8, D) f32 per-tile partials
    t = pl.program_id(0)
    nt = pl.num_programs(0)
    tb = feats_ref.shape[0]
    c = centers_ref.shape[0]

    # Exact gather: each one-hot row selects a single center row on the MXU.
    onehot = (labels_ref[...] ==
              lax.broadcasted_iota(jnp.int32, (tb, c), 1)).astype(jnp.float32)
    gathered = jnp.dot(onehot, centers_ref[...],
                       preferred_element_type=jnp.float32)
    diff = feats_ref[...] - gathered

    if has_pad:
        last = nt - 1

        @pl.when(t != last)
        def _():
            out_ref[...] = _tile_partial_sum(diff * diff)

        @pl.when(t == last)
        def _():
            rid = t * tb + lax.broadcasted_iota(jnp.int32, (tb, 1), 0)
            d = jnp.where(rid < true_batch, diff, 0.0)
            out_ref[...] = _tile_partial_sum(d * d)
    else:
        out_ref[...] = _tile_partial_sum(diff * diff)


# ---------------------------------------------------------------------------
# Path B: centers stay in HBM, per-row DMA gather double-buffered across tiles.
# ---------------------------------------------------------------------------
def _center_loss_hbm_kernel(true_batch, tile_b, has_pad,
                            labels_sref,   # SMEM (padded_B,) i32 (scalar prefetch)
                            feats_ref,     # VMEM (tile_b, D) f32
                            centers_hbm,   # ANY  (C, D) f32
                            out_ref,       # VMEM (8, D) f32 per-tile partials
                            cbuf,          # VMEM (2, tile_b, D) f32 double buffer
                            sems):         # DMA sems (2,), one per buffer slot
    t = pl.program_id(0)
    nt = pl.num_programs(0)
    slot = t % 2

    def gather(tile_idx, slot_idx, action):
        base = tile_idx * tile_b

        @pl.loop(0, tile_b)
        def _(r):
            row = base + r

            def one_row():
                lbl = labels_sref[row]   # same src index for start and wait
                cp = pltpu.make_async_copy(centers_hbm.at[lbl],
                                           cbuf.at[slot_idx, r],
                                           sems.at[slot_idx])
                if action == "start":
                    cp.start()
                else:
                    cp.wait()

            if has_pad:
                pl.when(row < true_batch)(one_row)   # skip pad-row DMAs
            else:
                one_row()

    # Prime the pipeline with the first tile.
    @pl.when(t == 0)
    def _():
        gather(t, slot, "start")

    # Prefetch the next tile's centers before waiting/computing on this one.
    @pl.when(t + 1 < nt)
    def _():
        gather(t + 1, 1 - slot, "start")

    gather(t, slot, "wait")

    diff = feats_ref[...] - cbuf[slot]
    tb = feats_ref.shape[0]

    if has_pad:
        last = nt - 1

        @pl.when(t != last)
        def _():
            out_ref[...] = _tile_partial_sum(diff * diff)

        @pl.when(t == last)
        def _():
            rid = t * tb + lax.broadcasted_iota(jnp.int32, (tb, 1), 0)
            # where() (not multiply-by-mask) so stale pad rows in cbuf can
            # never leak NaN/Inf into the sum.
            d = jnp.where(rid < true_batch, diff, 0.0)
            out_ref[...] = _tile_partial_sum(d * d)
    else:
        out_ref[...] = _tile_partial_sum(diff * diff)


# ---------------------------------------------------------------------------
# Wrapper
# ---------------------------------------------------------------------------
def center_loss_forward(features: jax.Array, centers: jax.Array,
                        labels: jax.Array, *, tile_b: int | None = None,
                        gather_from_hbm: bool | None = None) -> jax.Array:
    """CenterLoss.forward: sum((features - centers[labels])**2) / batch.

    features: (B, D) float, centers: (C, D) float, labels: (B,) int.

    Semantic note: out-of-range labels are clamped into [0, C-1] (PyTorch
    indexing would raise instead).
    """
    B, D = features.shape
    C, Dc = centers.shape
    assert D == Dc, (D, Dc)
    assert B >= 1

    features = features.astype(jnp.float32)
    centers = centers.astype(jnp.float32)
    labels = jnp.clip(labels.astype(jnp.int32), 0, C - 1)

    vmem_cap = _vmem_capacity_bytes()

    # --- path selection (generation-aware) ---------------------------------
    table_bytes = _round_up(C, 8) * _lane_pad(D) * 4
    table_budget = vmem_cap // 8          # ~8 MiB on v7x, ~16 MiB on v5e/v6e
    if gather_from_hbm is None:
        use_vmem_table = (table_bytes <= table_budget) and (C <= 2048)
    else:
        use_vmem_table = not gather_from_hbm
    # TODO(synk): on v5e with D < 128 (< 512 B rows) the HBM path wastes
    # bandwidth on sub-512B DMAs; prefer the VMEM-table path in that regime.

    # --- batch tile ---------------------------------------------------------
    if tile_b is None:
        # Large tiles amortize the ~0.35us per-grid-step overhead; keep ~4
        # row-sized buffers (features x2 + gathered centers x2) in a VMEM slice.
        budget = max(4 << 20, vmem_cap // 8)
        row_bytes = 4 * _lane_pad(D) * 4
        tile_b = min(2048, max(8, (budget // row_bytes) // 8 * 8))
    tile_b = max(8, (min(int(tile_b), _round_up(B, 8)) // 8) * 8)
    if use_vmem_table:
        # Bound the (tile_b, C) one-hot temporary to ~8 MiB.
        onehot_cap = max(8, ((8 << 20) // (_lane_pad(C) * 4)) // 8 * 8)
        tile_b = min(tile_b, onehot_cap)

    padded_b = _round_up(B, tile_b)
    has_pad = padded_b != B
    if has_pad:
        features = jnp.pad(features, ((0, padded_b - B), (0, 0)))
        labels = jnp.pad(labels, (0, padded_b - B))
    num_tiles = padded_b // tile_b

    feat_tile = tile_b * _lane_pad(D) * 4
    out_tile = 8 * _lane_pad(D) * 4
    out_shape = jax.ShapeDtypeStruct((num_tiles * 8, D), jnp.float32)

    if use_vmem_table:
        labels2d = labels.reshape(padded_b, 1)
        onehot_tmp = tile_b * _lane_pad(C) * 4
        est = (2 * feat_tile + 2 * tile_b * 128 * 4 + 2 * table_bytes
               + 2 * out_tile + onehot_tmp + 2 * feat_tile + (2 << 20))
        vmem_limit = int(min(max(est, 8 << 20), vmem_cap))

        partials = pl.pallas_call(
            functools.partial(_center_loss_vmem_kernel, B, has_pad),
            out_shape=out_shape,
            grid_spec=pltpu.PrefetchScalarGridSpec(
                num_scalar_prefetch=0,
                grid=(num_tiles,),
                in_specs=[
                    pl.BlockSpec((tile_b, 1), lambda t: (t, 0)),   # labels
                    pl.BlockSpec((tile_b, D), lambda t: (t, 0)),   # features
                    pl.BlockSpec((C, D), lambda t: (0, 0)),        # centers (resident)
                ],
                out_specs=pl.BlockSpec((8, D), lambda t: (t, 0)),
            ),
            compiler_params=pltpu.CompilerParams(
                # No carried state -> tiles can shard across both v7x cores.
                dimension_semantics=("parallel",),
                vmem_limit_bytes=vmem_limit,
            ),
        )(labels2d, features, centers)
    else:
        if padded_b > 65536:
            raise ValueError(
                "HBM-gather path scalar-prefetches all labels into SMEM; "
                f"batch {padded_b} exceeds the supported limit (65536).")
        n_feat_bufs = 3 if num_tiles >= 4 else 2
        feat_spec_kwargs = {}
        if n_feat_bufs == 3:
            feat_spec_kwargs["pipeline_mode"] = pl.Buffered(3)
        est = (n_feat_bufs * feat_tile + 2 * tile_b * _lane_pad(D) * 4
               + 2 * out_tile + 2 * feat_tile + (2 << 20))
        vmem_limit = int(min(max(est, 8 << 20), vmem_cap))

        partials = pl.pallas_call(
            functools.partial(_center_loss_hbm_kernel, B, tile_b, has_pad),
            out_shape=out_shape,
            grid_spec=pltpu.PrefetchScalarGridSpec(
                num_scalar_prefetch=1,                 # labels -> SMEM
                grid=(num_tiles,),
                in_specs=[
                    pl.BlockSpec((tile_b, D), lambda t, lbl: (t, 0),
                                 **feat_spec_kwargs),  # features
                    pl.BlockSpec(memory_space=pl.ANY), # centers stay in HBM
                ],
                out_specs=pl.BlockSpec((8, D), lambda t, lbl: (t, 0)),
                scratch_shapes=[
                    pltpu.VMEM((2, tile_b, D), jnp.float32),  # gathered centers x2
                    pltpu.SemaphoreType.DMA((2,)),            # one sem per slot
                ],
            ),
            compiler_params=pltpu.CompilerParams(
                # Cross-step gather prefetch carries state -> sequential axis.
                dimension_semantics=("arbitrary",),
                vmem_limit_bytes=vmem_limit,
            ),
        )(labels, features, centers)

    return jnp.sum(partials) / float(B)


if __name__ == "__main__":
    # Module config: CenterLoss(num_classes, feature_dim); small demo shapes.
    num_classes = 32
    feature_dim = 128
    batch = 16

    key = jax.random.PRNGKey(0)
    k_centers, k_feats, k_labels, k_feats2, k_labels2 = jax.random.split(key, 5)

    # nn.Parameter(torch.randn(num_classes, feature_dim)) analogue.
    centers = jax.random.normal(k_centers, (num_classes, feature_dim), dtype=jnp.float32)
    features = jax.random.normal(k_feats, (batch, feature_dim), dtype=jnp.float32)
    labels = jax.random.randint(k_labels, (batch,), 0, num_classes, dtype=jnp.int32)

    def ref_loss(f, c, l):
        return jnp.sum((f - c[l]) ** 2) / f.shape[0]

    # 1) VMEM-resident-table path, multi-tile grid.  (tile_b=8 is deliberately
    #    tiny so this small demo exercises multiple grid steps; real use should
    #    leave tile_b=None for the VMEM-budgeted default.)
    loss = jax.block_until_ready(center_loss_forward(features, centers, labels, tile_b=8))
    ref = ref_loss(features, centers, labels)
    assert jnp.allclose(loss, ref, rtol=1e-5, atol=1e-5), (loss, ref)

    # 2) Ragged batch -> padding path (mask applied on the last tile only).
    bb = 13
    loss_r = jax.block_until_ready(
        center_loss_forward(features[:bb], centers, labels[:bb], tile_b=8))
    ref_r = ref_loss(features[:bb], centers, labels[:bb])
    assert jnp.allclose(loss_r, ref_r, rtol=1e-5, atol=1e-5), (loss_r, ref_r)

    # 3) Default (auto) tile_b.
    loss_a = jax.block_until_ready(center_loss_forward(features, centers, labels))
    assert jnp.allclose(loss_a, ref, rtol=1e-5, atol=1e-5), (loss_a, ref)

    # 4) Forced HBM-gather path: double-buffered row gather + 3-deep feature
    #    pipeline (grid long enough to exercise the cross-step prefetch).
    batch2 = 64
    features2 = jax.random.normal(k_feats2, (batch2, feature_dim), dtype=jnp.float32)
    labels2 = jax.random.randint(k_labels2, (batch2,), 0, num_classes, dtype=jnp.int32)
    loss_h = jax.block_until_ready(
        center_loss_forward(features2, centers, labels2, tile_b=8, gather_from_hbm=True))
    ref_h = ref_loss(features2, centers, labels2)
    assert jnp.allclose(loss_h, ref_h, rtol=1e-5, atol=1e-5), (loss_h, ref_h)

    # 5) Ragged batch on the HBM-gather path (pad-row DMAs skipped).
    bb2 = 37
    loss_hr = jax.block_until_ready(
        center_loss_forward(features2[:bb2], centers, labels2[:bb2], tile_b=8,
                            gather_from_hbm=True))
    ref_hr = ref_loss(features2[:bb2], centers, labels2[:bb2])
    assert jnp.allclose(loss_hr, ref_hr, rtol=1e-5, atol=1e-5), (loss_hr, ref_hr)

    # TODO(synk): CenterLoss.update_centers (EMA center update) is training-side
    # parameter mutation, not part of forward(); left to the host/optimizer.
    print("KERNEL_OK")
</pallas_src>

<mosaic_0001>
module attributes {stable_mosaic.version = 11 : i64} {
  func.func @_center_loss_vmem_kernel(%arg0: i32, %arg1: memref<8x1xi32, #tpu.memory_space<vmem>>, %arg2: memref<8x128xf32, #tpu.memory_space<vmem>>, %arg3: memref<32x128xf32, #tpu.memory_space<vmem>>, %arg4: memref<8x128xf32, #tpu.memory_space<vmem>>) attributes {dimension_semantics = [#tpu.dimension_semantics<parallel>], iteration_bounds = array<i64: 2>, scalar_prefetch = 0 : i64, scratch_operands = 0 : i64, tpu.core_type = #tpu.core_type<tc>, window_params = [{transform_indices = @transform_0, window_bounds = array<i64: 8, 1>}, {transform_indices = @transform_1, window_bounds = array<i64: 8, 128>}, {pipeline_mode = #tpu.pipeline_mode<synchronous>, transform_indices = @transform_2, window_bounds = array<i64: 32, 128>}, {transform_indices = @transform_3, window_bounds = array<i64: 8, 128>}]} {
    %c0 = arith.constant 0 : index
    %c0_0 = arith.constant 0 : index
    %0 = vector.load %arg1[%c0, %c0_0] : memref<8x1xi32, #tpu.memory_space<vmem>>, vector<8x1xi32>
    %1 = tpu.iota {dimensions = array<i32: 1>} : vector<8x32xi32>
    %2 = vector.broadcast %0 : vector<8x1xi32> to vector<8x32xi32>
    %3 = arith.cmpi eq, %2, %1 : vector<8x32xi32>
    %4 = arith.extui %3 : vector<8x32xi1> to vector<8x32xi32>
    %5 = arith.sitofp %4 : vector<8x32xi32> to vector<8x32xf32>
    %c0_1 = arith.constant 0 : index
    %c0_2 = arith.constant 0 : index
    %6 = vector.load %arg3[%c0_1, %c0_2] : memref<32x128xf32, #tpu.memory_space<vmem>>, vector<32x128xf32>
    %cst = arith.constant dense<0.000000e+00> : vector<8x128xf32>
    %7 = tpu.matmul %5, %6, %cst {dimension_numbers = #tpu.dot_dimension_numbers<[1], [0], [0], [1], [0, 0, 1, 1], [], []>} : vector<8x32xf32>, vector<32x128xf32>, vector<8x128xf32> -> vector<8x128xf32>
    %c0_3 = arith.constant 0 : index
    %c0_4 = arith.constant 0 : index
    %8 = vector.load %arg2[%c0_3, %c0_4] : memref<8x128xf32, #tpu.memory_space<vmem>>, vector<8x128xf32>
    %9 = arith.subf %8, %7 : vector<8x128xf32>
    %10 = arith.mulf %9, %9 : vector<8x128xf32>
    %11 = vector.shape_cast %10 : vector<8x128xf32> to vector<1x8x128xf32>
    %cst_5 = arith.constant dense<0.000000e+00> : vector<8x128xf32>
    %12 = vector.multi_reduction <add>, %11, %cst_5 [0] : vector<1x8x128xf32> to vector<8x128xf32>
    %c0_6 = arith.constant 0 : index
    %c0_7 = arith.constant 0 : index
    %13 = vector.load %arg4[%c0_6, %c0_7] : memref<8x128xf32, #tpu.memory_space<vmem>>, vector<8x128xf32>
    tpu.vector_store %arg4[%c0_6, %c0_7], %12 {strides = array<i32>} : memref<8x128xf32, #tpu.memory_space<vmem>>, vector<8x128xf32>,
    return
  }
  func.func @transform_0(%arg0: i32) -> (i32, i32) {
    %c0_i32 = arith.constant 0 : i32
    %c0_i32_0 = arith.constant 0 : i32
    return %arg0, %c0_i32 : i32, i32
  }
  func.func @transform_1(%arg0: i32) -> (i32, i32) {
    %c0_i32 = arith.constant 0 : i32
    %c0_i32_0 = arith.constant 0 : i32
    return %arg0, %c0_i32 : i32, i32
  }
  func.func @transform_2(%arg0: i32) -> (i32, i32) {
    %c0_i32 = arith.constant 0 : i32
    %c0_i32_0 = arith.constant 0 : i32
    %c0_i32_1 = arith.constant 0 : i32
    return %c0_i32, %c0_i32_0 : i32, i32
  }
  func.func @transform_3(%arg0: i32) -> (i32, i32) {
    %c0_i32 = arith.constant 0 : i32
    %c0_i32_0 = arith.constant 0 : i32
    return %arg0, %c0_i32 : i32, i32
  }
}

</mosaic_0001>

<bundles_post_ra>
// kernel: tpu_custom_call.1
= control target key start
LH: loop header
LB: loop body
LE: loop exit
PB: predicated region body
PF: predicated region fallthrough
CT: control target
= control target key end

     0   :  { %8 = vsyncpa [#allocation3], 0  ;;  %s632_s0 = inlined_call_operand.vmem [shape: s32[16,1], index: 0, kind: input, shape index: {}]   ;;  %s633_s1 = inlined_call_operand.vmem [shape: f32[16,128], index: 1, kind: input, shape index: {}]   ;;  %s634_s2 = inlined_call_operand.hbm [shape: f32[32,128], index: 2, kind: input, shape index: {}]   ;;  %s635_s3 = inlined_call_operand.hbm [shape: f32[16,128], index: 3, kind: output, shape index: {}]  }
   0x1   :  { %9 = vsyncpa [#allocation4], 0 }
   0x2   :  { %11 = vsyncpa [#allocation4 + $0x1], 0  ;;  %s534_s12 = smov 0   ;;  %s536_s13 = smov 0  }
   0x3   :  { %s538_s14 = smov 0   ;;  %s540_s15 = smov 0  }
   0x4 LB: > { %s555_s16 = sadd.s32 4294967295, %s507_s15   ;;  %s341_s17 = sadd.s32 4294967294, %s507_s15   ;;  %s507_s15 = sphi %s540_s15, %s641_s15   ;;  %s503_s14 = sphi %s538_s14, %s640_s14   ;;  %s499_s13 = sphi %s536_s13, %s639_s13   ;;  %s495_s12 = sphi %s534_s12, %s638_s12  }
   0x5   : > { %s559_s18 = sadd.s32 1, %s507_s15   ;;  %s97_s19 = sadd.s32 1, %s503_s14 }
   0x6   : > { %s94_s20 = ssub.s32 %s507_s15, %s559_s18  ;;  %p107_p0 = scmp.ne.s32.totalorder %s503_s14, %s499_s13 }
   0x7   : > { %p95_p1 = scmp.eq.s32.totalorder %s94_s20, 0  ;;  %p108_p2 = scmp.eq.s32.totalorder %s555_s16, 1 }
   0x8   : > { %p113_p3 = scmp.ne.s32.totalorder %s499_s13, %s495_s12  ;;  %p114_p4 = scmp.eq.s32.totalorder %s341_s17, 1 }
   0x9   : > { %s570_s21 = scalar_select %p95_p1, %s503_s14, %s97_s19  }
   0xa   : > { %p572_p5 = por %p108_p2, %p107_p0  ;;  %p576_p6 = por %p114_p4, %p113_p3 }
   0xb   : > { %p342_p7 = scmp.ge.s32.totalorder %s507_s15, 1  ;;  %p121_p8 = scmp.lt.s32.totalorder %s507_s15, 3 }
   0xc   : > { %p370_p9 = scmp.eq.s32.totalorder %s555_s16, 0  ;;  %s132_s26 = sshll.u32 %s634_s2, 4  ;;  %s133_s26 = int_to_ptr.hbm [resolvable:$true] %s132_s26 }
   0xd   : > { %p122_p10 = pnand %p342_p7, %p121_p8  ;;  %s509_s27 = smov [#allocation2]  }
   0xe   : > { %s134_s28 = sshll.u32 %s509_s27, 4  ;;  %s510_s29 = smov 128   ;;  %s135_s28 = int_to_ptr.vmem [resolvable:$true] %s134_s28 }
   0xf   : > { %p362_p11 = pneg %p122_p10  ;;  %s511_s30 = smov 8  }
  0x10   : > { %164 = sbr.rel (%p122_p10) target bundleno = 279 (0x117), region = 32 }
  0x11   : > { %p363_p12 = pnand %p370_p9, %p362_p11 }
  0x13   : > { %365 = dma.hbm_to_vmem [thread:$0]  (!%p363_p12), %s133_s26, 512, %s135_s28, [#allocation3], %s510_s29, %s510_s29, %s511_s30  }
  0x15   : > { %486 = dma.done.wait (%p370_p9), [#allocation3], 512  }
  0x16   : > { %488 = vsyncadd (%p370_p9), [#allocation3], 4294966784  ;;  %p192_p13 = scmp.lt.s32.totalorder %s555_s16, 1  ;;  %v512_v0 = vmov 0   ;;  %v212_v2 = vld [vmem:[#allocation2 + $0x18] sm:$0xff]  ;;  %v211_v3 = vld [vmem:[#allocation2 + $0x10] sm:$0xff]  ;;  %v201_v6 = vlaneseq }
  0x17   : > { %410 = vset.pattern.permute.xlu0 %v512_v0  ;;  %229 = vmatpush.msra.mxu0 %v212_v2  ;;  %v210_v4 = vld [vmem:[#allocation2 + $0x8] sm:$0xff]  ;;  %v209_v5 = vld [vmem:[#allocation2] sm:$0xff]  ;;  %vm213_vm0 = vcmask 261120   ;;  %v513_v9 = vmov 0.0   ;;  %s189_s9 = sand.u32 1, %s499_s13   ;;  %s353_s11 = sshll.u32 %s555_s16, 3 }
  0x18   : > { %s193_s4 = scalar_select %p192_p13, %s555_s16, 1  ;;  %v202_v7 = vand.u32 127, %v201_v6 }
  0x19   : > { %230 = vmatpush.msra.mxu0 %v211_v3  ;;  %s347_s10 = sshll.u32 %s189_s9, 3  ;;  %s253_s26 = scalar_lea.hbm %s635_s3, %s353_s11 }
  0x1a   : > { %s348_s5 = sshll.u32 %s193_s4, 3  ;;  %s191_s27 = scalar_lea.vmem [#allocation5], %s347_s10 }
  0x1b   : > { %s195_s8 = scalar_lea.vmem %s632_s0, %s348_s5  ;;  %231 = vmatpush.msra.mxu0 %v210_v4  ;;  %s199_s20 = scalar_lea.vmem %s633_s1, %s348_s5 }
  0x1c   : > { %v200_v1 = vld [vmem:[%s195_s8] sm:$0xff]  ;;  %s255_s28 = sshll.u32 %s191_s27, 4  ;;  %s257_s29 = sshll.u32 %s253_s26, 4  ;;  %s256_s28 = int_to_ptr.vmem [resolvable:$true] %s255_s28  ;;  %s258_s29 = int_to_ptr.hbm [resolvable:$true] %s257_s29 }
  0x1d   : > { %204 = vperm.xlu0 %410, %v200_v1   ;;  %232 = vmatpush.msra.mxu0 %v209_v5  ;;  %v237_v11 = vld [vmem:[%s199_s20] sm:$0xff]  ;;  %s243_s16 = scalar_lea.sflag [#allocation4], %s189_s9  ;;  %s455_s30 = sshra.s32 %s258_s29, 4  ;;  %s456_s30 = int_to_ptr.hbm [resolvable:$true] %s455_s30 }
  0x1e   : > { %s457_s4 = scalar_lea.hbm %s456_s30, 8  ;;  %s461_s7 = scalar_lea.hbm %s635_s3, 16 }
  0x1f   : > { %p458_p0 = scmp.ne.s32.totalorder %s456_s30, %s457_s4  ;;  %p462_p3 = scmp.lt.s32.totalorder %s456_s30, %s635_s3 }
  0x20   : > { %p463_p4 = scmp.lt.s32.totalorder %s461_s7, %s457_s4 }
  0x21   : > { %p459_p1 = pnand %p458_p0, %p572_p5 }
  0x22   : > { %p464_p7 = por %p463_p4, %p462_p3 }
  0x23   : > { %p460_p2 = pneg %p459_p1 }
  0x25   : > { %p465_p8 = pnand %p464_p7, %p460_p2 }
  0x8f   : > { %v205_v8 = vpop.permute.xlu0 %204 }
  0x90   : > { %vm206_vm1 = vcmp.eq.s32.totalorder %v205_v8, %v202_v7 }
  0x91   : > { %v350_v10 = vsel %vm206_vm1, 1.0, %v513_v9 }
  0x92   : > { %351 = vmatmul.msk.f32.vlgmr.msra.gmra.mxu0 %vm213_vm0, %v350_v10 }
 0x10f   : > { %v234_v12 = vpop.f32.mrf.mxu0 }
 0x110   : > { %v238_v13 = vsub.f32 %v237_v11, %v234_v12 }
 0x112   : > { %v239_v14 = vmul.f32 %v238_v13, %v238_v13 }
 0x114   : > { %241 = vst [vmem:[%s191_s27] sm:$0xff] %v239_v14 }
 0x115   : > { %468 = shalt.err (!%p465_p8)
}
 0x116   : > { %360 = dma.vmem_to_hbm [thread:$0]  (%p572_p5), %s256_s28, 128, %s258_s29, %s243_s16  }
 0x117 PF: > { %p372_p9 = scmp.ge.s32.totalorder %s507_s15, 2  ;;  %s269_s9 = sand.u32 1, %s495_s12  }
 0x118   : > { %s270_s11 = scalar_lea.sflag [#allocation4], %s269_s9 }
 0x119   : > { %p367_p10 = pnand %p372_p9, %p576_p6 }
 0x11b   : > { %p368_p11 = pneg %p367_p10 }
 0x11d   : > { %490 = dma.done.wait (%p368_p11), %s270_s11, 128  }
 0x11e   : > { %492 = vsyncadd (%p368_p11), %s270_s11, 4294967168  ;;  %p14_p12 = scmp.ge.s32.totalorder %s559_s18, 4   ;;  %s638_s12 = smov %s499_s13 }
 0x11f   : > { %s639_s13 = smov %s503_s14  ;;  %s640_s14 = smov %s570_s21 }
 0x120   : > { %s641_s15 = smov %s559_s18  ;;  %16 = sbr.rel (!%p14_p12) target bundleno = 4 (0x4), region = 75 }
 0x125   :  { %276 = vsyncpa [#allocation3], 1 }
 0x126   :  { %278 = vsyncpa [#allocation3 + $0x1], 1 }
 0x127   :  { %279 = vsyncpa [#allocation4], 1 }
 0x128   :  { %281 = vsyncpa [#allocation4 + $0x1], 1 }

</bundles_post_ra>
